<compile_context>
chip_gen: v7x
topology: tpu7x:2x2x1
jax: 0.10.0
libtpu: 0.0.40
codegen_flags: <defaults>
</compile_context>

<pallas_src>
import functools
import math

import numpy as np

import jax
import jax.numpy as jnp
from jax.experimental import pallas as pl
from jax.experimental.pallas import tpu as pltpu


def _ru(x, m):
    return (x + m - 1) // m * m


# ---------------------------------------------------------------------------
# Pallas kernel 1: single-shot full-K GEMM, fused bias (+ SiLU) epilogue.
# ---------------------------------------------------------------------------
def _mm_kernel(a_ref, b_ref, bias_ref, o_ref, *, apply_silu):
    y = jnp.dot(a_ref[...], b_ref[...], preferred_element_type=jnp.float32)
    y = y + bias_ref[...]
    if apply_silu:
        y = y * jax.nn.sigmoid(y)
    o_ref[...] = y.astype(o_ref.dtype)


def _choose_tn(K, N):
    cap = max(128, (4 * 1024 * 1024) // (2 * K))      # keep B block <= ~4 MiB
    if N <= cap or N < 256:
        return N                                       # full-N block (legal)
    for t in (512, 384, 256, 128):
        if t <= cap and N % t == 0:
            return t
    return N


def _choose_tm(M, K, n_tiles):
    if M <= 512:
        tm = M
    else:
        cap = max(8, min(1024, (2 * 1024 * 1024) // (2 * K)))  # A blk <= ~2MiB
        tm = 8
        while tm * 2 <= cap and M % (tm * 2) == 0:
            tm *= 2
    # v7x megacore: keep >= 2 parallel grid steps when there is enough work.
    if n_tiles == 1 and tm == M and M >= 16 and (M // 2) % 8 == 0:
        tm = M // 2
    return tm


def matmul_bias_act(a, w, bias, apply_silu):
    """a: (M, K) bf16, w: (K, N) bf16, bias: (N,) f32 -> (M, N) bf16.

    Full-K single-shot GEMM (no K grid axis, no accumulator scratch).  Grid is
    (N-tiles, M-tiles) with M innermost: the weight block index is constant
    over the inner loop so it stays resident in VMEM (fetched once per N tile,
    and exactly once when N fits a single tile).
    """
    M, K = a.shape
    N = w.shape[1]
    if K < 8:                                   # tiny first-layer K (Cin=3)
        a = jnp.pad(a, ((0, 0), (0, 8 - K)))
        w = jnp.pad(w, ((0, 8 - K), (0, 0)))
        K = 8
    tn = _choose_tn(K, N)
    tm = _choose_tm(M, K, N // tn)
    Mp = _ru(M, tm)
    if Mp != M:
        a = jnp.pad(a, ((0, Mp - M), (0, 0)))
    grid = (N // tn, Mp // tm)
    out = pl.pallas_call(
        functools.partial(_mm_kernel, apply_silu=apply_silu),
        out_shape=jax.ShapeDtypeStruct((Mp, N), jnp.bfloat16),
        grid=grid,
        in_specs=[
            pl.BlockSpec((tm, K), lambda j, i: (i, 0)),
            pl.BlockSpec((K, tn), lambda j, i: (0, j)),
            pl.BlockSpec((1, tn), lambda j, i: (0, j)),
        ],
        out_specs=pl.BlockSpec((tm, tn), lambda j, i: (i, j)),
        compiler_params=pltpu.CompilerParams(
            dimension_semantics=("parallel", "parallel"),
            vmem_limit_bytes=32 * 1024 * 1024),
    )(a, w, bias.reshape(1, N))
    if Mp != M:
        out = out[:M]
    return out


# ---------------------------------------------------------------------------
# Pallas kernel 2: GroupNorm apply (+ optional residual) + SiLU, lane-dense.
# ---------------------------------------------------------------------------
def _gn_kernel(x_ref, sc_ref, sh_ref, o_ref):
    y = x_ref[...].astype(jnp.float32) * sc_ref[...] + sh_ref[...]
    o_ref[...] = (y * jax.nn.sigmoid(y)).astype(o_ref.dtype)


def _gn_res_kernel(x_ref, sc_ref, sh_ref, r_ref, o_ref):
    y = x_ref[...].astype(jnp.float32) * sc_ref[...] + sh_ref[...]
    y = y + r_ref[...].astype(jnp.float32)
    o_ref[...] = (y * jax.nn.sigmoid(y)).astype(o_ref.dtype)


def _gn_impl(x, res, gamma, beta, groups, eps=1e-5):
    B, H, W, C = x.shape
    HW = H * W
    Cg = C // groups

    # statistics: centered two-pass variance in f32 (XLA fused reductions).
    xf = x.reshape(B, HW, groups, Cg).astype(jnp.float32)
    mean = jnp.mean(xf, axis=(1, 3), keepdims=True)
    var = jnp.mean(jnp.square(xf - mean), axis=(1, 3), keepdims=True)
    rstd = jax.lax.rsqrt(var + eps)
    g2 = gamma.reshape(1, 1, groups, Cg)
    b2 = beta.reshape(1, 1, groups, Cg)
    scale = (rstd * g2).reshape(B, 1, C)
    shift = (b2 - mean * rstd * g2).reshape(B, 1, C)

    # lane folding: fold f spatial positions into the lane axis so C<128
    # stages still store with 128-dense lanes.
    f = 1
    while C * f < 128 and HW % (f * 2) == 0:
        f *= 2
    R = HW // f
    Cf = C * f
    x2 = x.reshape(B, R, Cf)
    scale = jnp.tile(scale, (1, 1, f))
    shift = jnp.tile(shift, (1, 1, f))

    cap = max(8, (1 << 20) // (2 * Cf))          # row tile <= ~1 MiB
    tr = 1
    while tr * 2 <= min(R, cap) and R % (tr * 2) == 0:
        tr *= 2

    xspec = pl.BlockSpec((1, tr, Cf), lambda b, r: (b, r, 0))
    sspec = pl.BlockSpec((1, 1, Cf), lambda b, r: (b, 0, 0))
    if res is None:
        kernel = _gn_kernel
        in_specs = [xspec, sspec, sspec]
        args = [x2, scale, shift]
    else:
        kernel = _gn_res_kernel
        in_specs = [xspec, sspec, sspec, xspec]
        args = [x2, scale, shift, res.reshape(B, R, Cf)]

    out = pl.pallas_call(
        kernel,
        out_shape=jax.ShapeDtypeStruct((B, R, Cf), x.dtype),
        grid=(B, R // tr),
        in_specs=in_specs,
        out_specs=xspec,
        compiler_params=pltpu.CompilerParams(
            dimension_semantics=("parallel", "parallel")),
    )(*args)
    return out.reshape(B, H, W, C)


@functools.partial(jax.jit, static_argnames=("groups",))
def group_norm_silu(x, gamma, beta, *, groups):
    return _gn_impl(x, None, gamma, beta, groups)


@functools.partial(jax.jit, static_argnames=("groups",))
def group_norm_add_silu(x, res, gamma, beta, *, groups):
    return _gn_impl(x, res, gamma, beta, groups)


# ---------------------------------------------------------------------------
# Pallas kernel 3: scaled-dot-product attention core (head groups per step).
# ---------------------------------------------------------------------------
def _attn_kernel(q_ref, k_ref, v_ref, o_ref, *, scale):
    q = q_ref[...]
    k = k_ref[...]
    v = v_ref[...]
    s = jax.lax.dot_general(q, k, (((2,), (2,)), ((0,), (0,))),
                            preferred_element_type=jnp.float32) * scale
    m = jnp.max(s, axis=-1, keepdims=True)
    p = jnp.exp(s - m)
    l = jnp.sum(p, axis=-1, keepdims=True)
    o = jax.lax.dot_general(p.astype(v.dtype), v, (((2,), (1,)), ((0,), (0,))),
                            preferred_element_type=jnp.float32)
    o_ref[...] = (o / l).astype(o_ref.dtype)


def attention_core(q, k, v):
    BH, S, hd = q.shape
    hb = max(1, min(BH, (2 * 1024 * 1024) // max(1, 4 * S * S)))
    if BH >= 2:
        hb = min(hb, BH // 2)          # >= 2 parallel steps (v7x megacore)
    while BH % hb:
        hb -= 1
    scale = 1.0 / math.sqrt(hd)
    return pl.pallas_call(
        functools.partial(_attn_kernel, scale=scale),
        out_shape=jax.ShapeDtypeStruct((BH, S, hd), q.dtype),
        grid=(BH // hb,),
        in_specs=[pl.BlockSpec((hb, S, hd), lambda b: (b, 0, 0))] * 3,
        out_specs=pl.BlockSpec((hb, S, hd), lambda b: (b, 0, 0)),
        compiler_params=pltpu.CompilerParams(
            dimension_semantics=("parallel",),
            vmem_limit_bytes=40 * 1024 * 1024),
    )(q, k, v)


# ---------------------------------------------------------------------------
# Jitted composite ops (NHWC bf16).  Glue fuses with the pallas_call inside
# the jit; the jit cache bounds compile count by the number of unique shapes.
# ---------------------------------------------------------------------------
@functools.partial(jax.jit,
                   static_argnames=("ksize", "stride", "padding", "n_out",
                                    "apply_silu"))
def conv2d_nhwc(x, w, b, *, ksize, stride, padding, n_out, apply_silu):
    B, H, W, Cin = x.shape
    Ho = (H + 2 * padding - ksize) // stride + 1
    Wo = (W + 2 * padding - ksize) // stride + 1
    xp = x
    if padding:
        xp = jnp.pad(x, ((0, 0), (padding, padding), (padding, padding),
                         (0, 0)))
    if ksize == 1 and stride == 1:
        patch = xp.reshape(B * Ho * Wo, Cin)
    else:
        parts = []
        for ki in range(ksize):
            for kj in range(ksize):
                he = ki + stride * (Ho - 1) + 1
                we = kj + stride * (Wo - 1) + 1
                parts.append(xp[:, ki:he:stride, kj:we:stride, :])
        patch = (parts[0] if len(parts) == 1
                 else jnp.concatenate(parts, axis=-1))
        patch = patch.reshape(B * Ho * Wo, ksize * ksize * Cin)
    out = matmul_bias_act(patch, w, b, apply_silu)
    if out.shape[1] != n_out:
        out = out[:, :n_out]
    return out.reshape(B, Ho, Wo, n_out)


@functools.partial(jax.jit, static_argnames=("apply_silu",))
def conv_transpose_k4s2p1(x, w0, w1, w2, w3, b, *, apply_silu):
    """Sub-pixel phase decomposition of ConvTranspose2d(k=4, s=2, p=1)."""
    B, H, W, Cin = x.shape
    N = w0.shape[1]
    ws = (w0, w1, w2, w3)
    xp = jnp.pad(x, ((0, 0), (1, 1), (1, 1), (0, 0)))
    outs = []
    for ry in range(2):
        dys = (-1, 0) if ry == 0 else (0, 1)
        for rx in range(2):
            dxs = (-1, 0) if rx == 0 else (0, 1)
            parts = [xp[:, 1 + dy:1 + dy + H, 1 + dx:1 + dx + W, :]
                     for dy in dys for dx in dxs]
            patch = jnp.concatenate(parts, axis=-1).reshape(B * H * W, 4 * Cin)
            o = matmul_bias_act(patch, ws[ry * 2 + rx], b, apply_silu)
            outs.append(o.reshape(B, H, W, N))
    y = jnp.stack(outs, axis=3).reshape(B, H, W, 2, 2, N)
    y = y.transpose(0, 1, 3, 2, 4, 5).reshape(B, 2 * H, 2 * W, N)
    return y


@functools.partial(jax.jit, static_argnames=("heads",))
def mhsa_block(x, wq, bq, wk, bk, wv, bv, wo, bo, *, heads):
    B, H, W, C = x.shape
    S = H * W
    hd = C // heads
    xs = x.reshape(B * S, C)
    q = matmul_bias_act(xs, wq, bq, False)
    k = matmul_bias_act(xs, wk, bk, False)
    v = matmul_bias_act(xs, wv, bv, False)

    def split(t):
        return t.reshape(B, S, heads, hd).transpose(0, 2, 1, 3).reshape(
            B * heads, S, hd)

    o = attention_core(split(q), split(k), split(v))
    o = o.reshape(B, heads, S, hd).transpose(0, 2, 1, 3).reshape(B * S, C)
    o = matmul_bias_act(o, wo, bo, False)
    return o.reshape(B, H, W, C)


# ---------------------------------------------------------------------------
# Parameter init (deterministic, synthetic).  Weights are stored in the GEMM
# layout (K, N) bf16 once, at init.  Biases are zero (SiLU(0)=0, harmless).
# ---------------------------------------------------------------------------
def _xavier(rng, shape, fan_in, fan_out):
    limit = math.sqrt(6.0 / (fan_in + fan_out))
    u = rng.random(size=shape, dtype=np.float32)
    return (u * 2.0 - 1.0) * np.float32(limit)


def init_conv(rng, cin, cout, k):
    w = _xavier(rng, (cout, cin, k, k), cin * k * k, cout * k * k)
    K = k * k * cin
    wm = np.transpose(w, (2, 3, 1, 0)).reshape(K, cout)
    n_pad = cout if cout >= 16 else _ru(cout, 128)     # only the 3-ch head pads
    if n_pad != cout:
        wm = np.concatenate([wm, np.zeros((K, n_pad - cout), np.float32)], 1)
    return {"w": jnp.asarray(wm, jnp.bfloat16),
            "b": jnp.zeros((n_pad,), jnp.float32),
            "k": k, "cout": cout}


def init_convT(rng, cin, cout):
    # ConvTranspose2d weight (Cin, Cout, 4, 4); always k=4, s=2, p=1 here.
    w = _xavier(rng, (cin, cout, 4, 4), cout * 16, cin * 16)
    phases = []
    for ry in range(2):
        kys = (3, 1) if ry == 0 else (2, 0)
        for rx in range(2):
            kxs = (3, 1) if rx == 0 else (2, 0)
            blocks = [w[:, :, ky, kx] for ky in kys for kx in kxs]
            phases.append(jnp.asarray(np.concatenate(blocks, axis=0),
                                      jnp.bfloat16))
    return {"w": phases, "b": jnp.zeros((cout,), jnp.float32), "cout": cout}


def init_gn(cout, groups):
    return {"g": jnp.ones((cout,), jnp.float32),
            "b": jnp.zeros((cout,), jnp.float32), "G": groups}


def init_mhsa(rng, dim, heads):
    def lin():
        w = _xavier(rng, (dim, dim), dim, dim)
        return {"w": jnp.asarray(w, jnp.bfloat16),
                "b": jnp.zeros((dim,), jnp.float32)}
    return {"q": lin(), "k": lin(), "v": lin(), "o": lin(), "heads": heads}


def init_resnet_single(rng, cin, cout, stride):
    p = {"type": "res_single", "stride": stride}
    p["conv_skip"] = (init_conv(rng, cin, cout, 1)
                      if (stride == 2 or cin != cout) else None)
    p["conv1"] = init_conv(rng, cin, cout, 3)
    p["conv2"] = init_conv(rng, cout, cout, 3)
    g = min(32, cout)
    p["gn1"] = init_gn(cout, g)
    p["gn2"] = init_gn(cout, g)
    return p


def init_resnet_single_t(rng, cin, cout):
    p = {"type": "res_single_t"}
    if cin > cout:
        p["conv_skip"] = init_convT(rng, cin, cout)
        p["conv1"] = init_convT(rng, cin, cout)
        p["conv1_is_t"] = True
    else:
        p["conv_skip"] = None
        p["conv1"] = init_conv(rng, cout, cout, 3)
        p["conv1_is_t"] = False
    p["conv2"] = init_conv(rng, cout, cout, 3)
    g = 28 if cout == 112 else min(32, cout)
    p["gn1"] = init_gn(cout, g)
    p["gn2"] = init_gn(cout, g)
    return p


def init_resnet_block(rng, cin, cout, stride, heads, transpose, num_blocks=6):
    blocks = []
    if transpose:
        blocks.append(init_resnet_single_t(rng, cin, cout))
        for _ in range(num_blocks - 1):
            blocks.append(init_resnet_single_t(rng, cout, cout))
    else:
        blocks.append(init_resnet_single(rng, cin, cout, stride))
        for _ in range(num_blocks - 1):
            blocks.append(init_resnet_single(rng, cout, cout, 1))
    attn = init_mhsa(rng, cout, heads) if heads > 0 else None
    return {"type": "resnet_t" if transpose else "resnet",
            "blocks": blocks, "attn": attn}


def init_model(seed=0):
    rng = np.random.default_rng(seed)
    down = []
    ns = [3, 16, 32, 64, 128, 256, 512, 1024]
    ns2 = [16, 32, 64, 128, 256, 512, 1024, 2048]
    ks = [3, 3, 3, 3, 3, 3, 3, 2]
    paddings = [1, 1, 1, 1, 1, 1, 1, 0]
    strides = [2, 2, 2, 2, 2, 2, 2, 1]
    heads = [0, 0, 0, 8, 8, 8, 8, 0]
    for i in range(8):
        if ks[i] == 3:
            down.append(init_resnet_block(rng, ns[i], ns2[i], strides[i],
                                          heads[i], transpose=False))
        else:
            down.append({"type": "convact",
                         "conv": init_conv(rng, ns[i], ns2[i], ks[i]),
                         "stride": strides[i], "padding": paddings[i]})
    mid = [
        {"type": "convact", "conv": init_conv(rng, 2048, 4096, 1),
         "stride": 1, "padding": 0},
        {"type": "mhsa", "attn": init_mhsa(rng, 4096, 8)},
        {"type": "convact", "conv": init_conv(rng, 4096, 2048, 1),
         "stride": 1, "padding": 0},
    ]
    up = []
    ns = [2048, 2048, 1536, 1024, 640, 384, 224, 128, 64]
    ns2 = [1024, 1024, 768, 512, 320, 192, 112, 64, 3]
    ks = [4, 4, 4, 4, 4, 4, 4, 4, 3]
    strides = [2, 2, 2, 2, 2, 2, 2, 2, 1]
    heads = [0, 8, 8, 8, 8, 0, 0, 0, 0]
    for i in range(9):
        if i < 8:
            if ks[i] == 4 and i > 0:
                up.append(init_resnet_block(rng, ns[i], ns2[i], strides[i],
                                            heads[i], transpose=True))
            else:
                up.append({"type": "convtact",
                           "conv": init_convT(rng, ns[i], ns2[i])})
        else:
            up.append({"type": "conv",
                       "conv": init_conv(rng, ns[i], ns2[i], ks[i]),
                       "stride": strides[i], "padding": 1})
    return {"down": down, "mid": mid, "up": up}


# ---------------------------------------------------------------------------
# Forward (Python orchestration over jitted composites, NHWC bf16).
# ---------------------------------------------------------------------------
def conv_fwd(x, p, stride, padding, silu):
    return conv2d_nhwc(x, p["w"], p["b"], ksize=p["k"], stride=stride,
                       padding=padding, n_out=p["cout"], apply_silu=silu)


def convT_fwd(x, p, silu):
    w = p["w"]
    return conv_transpose_k4s2p1(x, w[0], w[1], w[2], w[3], p["b"],
                                 apply_silu=silu)


def mhsa_fwd(x, p):
    return mhsa_block(x, p["q"]["w"], p["q"]["b"], p["k"]["w"], p["k"]["b"],
                      p["v"]["w"], p["v"]["b"], p["o"]["w"], p["o"]["b"],
                      heads=p["heads"])


def resnet_single_fwd(x, p):
    skip = x
    if p["conv_skip"] is not None:
        skip = conv_fwd(x, p["conv_skip"], p["stride"], 0, False)
    h = conv_fwd(x, p["conv1"], p["stride"], 1, False)
    h = group_norm_silu(h, p["gn1"]["g"], p["gn1"]["b"], groups=p["gn1"]["G"])
    h = conv_fwd(h, p["conv2"], 1, 1, False)
    return group_norm_add_silu(h, skip, p["gn2"]["g"], p["gn2"]["b"],
                               groups=p["gn2"]["G"])


def resnet_single_t_fwd(x, p):
    skip = x
    if p["conv1_is_t"]:
        skip = convT_fwd(x, p["conv_skip"], False)
        h = convT_fwd(x, p["conv1"], False)
    else:
        h = conv_fwd(x, p["conv1"], 1, 1, False)
    h = group_norm_silu(h, p["gn1"]["g"], p["gn1"]["b"], groups=p["gn1"]["G"])
    h = conv_fwd(h, p["conv2"], 1, 1, False)
    return group_norm_add_silu(h, skip, p["gn2"]["g"], p["gn2"]["b"],
                               groups=p["gn2"]["G"])


def resnet_block_fwd(x, p):
    for b in p["blocks"]:
        if b["type"] == "res_single":
            x = resnet_single_fwd(x, b)
        else:
            x = resnet_single_t_fwd(x, b)
    if p["attn"] is not None:
        x = mhsa_fwd(x, p["attn"])
    return x


def apply_block(x, p):
    t = p["type"]
    if t in ("resnet", "resnet_t"):
        return resnet_block_fwd(x, p)
    if t == "convact":
        return conv_fwd(x, p["conv"], p["stride"], p["padding"], True)
    if t == "convtact":
        return convT_fwd(x, p["conv"], True)
    if t == "conv":
        return conv_fwd(x, p["conv"], p["stride"], p["padding"], False)
    if t == "mhsa":
        return mhsa_fwd(x, p["attn"])
    raise ValueError(t)


def model_forward(x_nchw, params):
    # NCHW f32 -> NHWC bf16 once at the boundary.
    x = jnp.transpose(x_nchw, (0, 2, 3, 1)).astype(jnp.bfloat16)
    h = []
    for blk in params["down"]:
        x = apply_block(x, blk)
        h.append(x)
    for blk in params["mid"]:
        x = apply_block(x, blk)
    hr = list(reversed(h))
    n_up = len(params["up"])
    for i, blk in enumerate(params["up"]):
        if 0 < i < n_up - 1:
            x = jnp.concatenate([x, hr[i]], axis=-1)   # channel concat (NHWC)
        x = apply_block(x, blk)
    return jnp.transpose(x, (0, 3, 1, 2)).astype(jnp.float32)


# ---------------------------------------------------------------------------
if __name__ == "__main__":
    # The architecture (7 stride-2 stages + a k=2 valid conv, mirrored up path
    # with skip concats) only admits 256x256 inputs; batch=1 is the smallest
    # example the module allows.
    x = jax.random.normal(jax.random.PRNGKey(0), (1, 3, 256, 256), jnp.float32)
    params = init_model(seed=0)

    out = model_forward(x, params)
    out = jax.block_until_ready(out)
    assert out.shape == (1, 3, 256, 256), out.shape
    print("KERNEL_OK")
</pallas_src>

<mosaic_0001>
module attributes {stable_mosaic.version = 11 : i64} {
  func.func @_mm_kernel(%arg0: i32, %arg1: i32, %arg2: memref<1024x8xbf16, #tpu.memory_space<vmem>>, %arg3: memref<8x16xbf16, #tpu.memory_space<vmem>>, %arg4: memref<1x16xf32, #tpu.memory_space<vmem>>, %arg5: memref<1024x16xbf16, #tpu.memory_space<vmem>>) attributes {dimension_semantics = [#tpu.dimension_semantics<parallel>, #tpu.dimension_semantics<parallel>], iteration_bounds = array<i64: 1, 16>, scalar_prefetch = 0 : i64, scratch_operands = 0 : i64, tpu.core_type = #tpu.core_type<tc>, window_params = [{transform_indices = @transform_0, window_bounds = array<i64: 1024, 8>}, {transform_indices = @transform_1, window_bounds = array<i64: 8, 16>}, {transform_indices = @transform_2, window_bounds = array<i64: 1, 16>}, {transform_indices = @transform_3, window_bounds = array<i64: 1024, 16>}]} {
    %c0 = arith.constant 0 : index
    %c0_0 = arith.constant 0 : index
    %0 = vector.load %arg2[%c0, %c0_0] : memref<1024x8xbf16, #tpu.memory_space<vmem>>, vector<1024x8xbf16>
    %c0_1 = arith.constant 0 : index
    %c0_2 = arith.constant 0 : index
    %1 = vector.load %arg3[%c0_1, %c0_2] : memref<8x16xbf16, #tpu.memory_space<vmem>>, vector<8x16xbf16>
    %cst = arith.constant dense<0.000000e+00> : vector<1024x16xf32>
    %2 = tpu.matmul %0, %1, %cst {dimension_numbers = #tpu.dot_dimension_numbers<[1], [0], [0], [1], [0, 0, 1, 1], [], []>} : vector<1024x8xbf16>, vector<8x16xbf16>, vector<1024x16xf32> -> vector<1024x16xf32>
    %c0_3 = arith.constant 0 : index
    %c0_4 = arith.constant 0 : index
    %3 = vector.load %arg4[%c0_3, %c0_4] : memref<1x16xf32, #tpu.memory_space<vmem>>, vector<1x16xf32>
    %4 = vector.broadcast %3 : vector<1x16xf32> to vector<1024x16xf32>
    %5 = arith.addf %2, %4 : vector<1024x16xf32>
    %6 = arith.truncf %5 : vector<1024x16xf32> to vector<1024x16xbf16>
    %c0_5 = arith.constant 0 : index
    %c0_6 = arith.constant 0 : index
    %7 = vector.load %arg5[%c0_5, %c0_6] : memref<1024x16xbf16, #tpu.memory_space<vmem>>, vector<1024x16xbf16>
    tpu.vector_store %arg5[%c0_5, %c0_6], %6 {strides = array<i32>} : memref<1024x16xbf16, #tpu.memory_space<vmem>>, vector<1024x16xbf16>,
    return
  }
  func.func @transform_0(%arg0: i32, %arg1: i32) -> (i32, i32) {
    %c0_i32 = arith.constant 0 : i32
    %c0_i32_0 = arith.constant 0 : i32
    return %arg1, %c0_i32 : i32, i32
  }
  func.func @transform_1(%arg0: i32, %arg1: i32) -> (i32, i32) {
    %c0_i32 = arith.constant 0 : i32
    %c0_i32_0 = arith.constant 0 : i32
    return %c0_i32, %arg0 : i32, i32
  }
  func.func @transform_2(%arg0: i32, %arg1: i32) -> (i32, i32) {
    %c0_i32 = arith.constant 0 : i32
    %c0_i32_0 = arith.constant 0 : i32
    return %c0_i32, %arg0 : i32, i32
  }
  func.func @transform_3(%arg0: i32, %arg1: i32) -> (i32, i32) {
    %c0_i32 = arith.constant 0 : i32
    return %arg1, %arg0 : i32, i32
  }
}

</mosaic_0001>

<bundles_post_ra>
// kernel: conv2d_nhwc.1
= control target key start
LH: loop header
LB: loop body
LE: loop exit
PB: predicated region body
PF: predicated region fallthrough
CT: control target
= control target key end

     0   :  { %s2896_s12 = smov 0   ;;  %s2898_s13 = smov 0   ;;  %s3460_s0 = inlined_call_operand.vmem [shape: bf16[16384,8], index: 0, kind: input, shape index: {}]   ;;  %s3461_s1 = inlined_call_operand.vmem [shape: bf16[8,16], index: 1, kind: input, shape index: {}]   ;;  %s3462_s2 = inlined_call_operand.vmem [shape: f32[1,16], index: 2, kind: input, shape index: {}]   ;;  %s3463_s3 = inlined_call_operand.vmem [shape: bf16[16384,16], index: 3, kind: output, shape index: {}]  }
   0x1   :  { %s2900_s14 = smov 0  }
   0x2 LB: > { %s22_s15 = sadd.s32 1, %s2870_s13  ;;  %p2173_p0 = scmp.ge.s32.totalorder %s2874_s14, 1  ;;  %s2874_s14 = sphi %s2900_s14, %s13_s14   ;;  %s2870_s13 = sphi %s2898_s13, %s3465_s13   ;;  %s2866_s12 = sphi %s2896_s12, %s3464_s12  }
   0x3   : > { %p23_p1 = scmp.ge.s32.totalorder %s22_s15, 16  ;;  %p169_p2 = scmp.lt.s32.totalorder %s2874_s14, 17 }
   0x5   : > { %s3467_s15 = smov (%p23_p1, %s22_s15), 0  ;;  %p170_p3 = pnand %p2173_p0, %p169_p2 }
   0x6   : > { %v354_v0 = vld [vmem:[%s3461_s1] sm:$0xf] (!%p170_p3)  ;;  %vm875_vm0 = vcmask (!%p170_p3), 1043456   ;;  %s2174_s18 = sshll.u32 (!%p170_p3), %s2866_s12, 7  ;;  %vm682_vm1 = vcmask (!%p170_p3), 64512   ;;  %vm1936_vm2 = vcmask (!%p170_p3), 125952  }
   0x7   : > { %173 = sbr.rel (%p170_p3) target bundleno = 360 (0x168), region = 32  ;;  %2762 = vmatprep.subr.msk.bf16.mxu0 (!%p170_p3), %vm875_vm0, %v354_v0  ;;  %2763 = vmatprep.subr.msk.bf16.mxu1 (!%p170_p3), %vm875_vm0, %v354_v0  ;;  %v877_v1 = vsel (!%p170_p3), %vm875_vm0, %v354_v0, 0  ;;  %p204_p4 = scmp.lt.s32.totalorder (!%p170_p3), %s2174_s18, 2047 }
   0x8   : > { %2631 = vmatpush3.bf16.msra.mxu0 (!%p170_p3), %v877_v1  ;;  %2761 = vmatpush3.bf16.msra.mxu1 (!%p170_p3), %v877_v1 }
   0xe   : > { %s3469_s18 = smov (!%p204_p4, %s2174_s18), 2047 }
   0xf   : > { %s2175_s19 = sshll.u32 %s3469_s18, 2 }
  0x10   : > { %s2925_s22 = scalar_lea.vmem %s3460_s0, %s2175_s19  ;;  %s3066_s27 = scalar_lea.vmem %s3463_s3, %s2175_s19 }
  0x11   : > { %v2788_v2 = vld [vmem:[%s2925_s22] sm:$0xff]   ;;  %v2790_v4 = vld [vmem:[%s2925_s22 + $0x8] sm:$0xff]   ;;  %v2792_v6 = vld [vmem:[%s2925_s22 + $0x10] sm:$0xff]  }
  0x12   : > { %v2789_v3 = vld [vmem:[%s2925_s22 + $0x100] sm:$0xff]   ;;  %2632 = vmatprep.mubr.msk.bf16.mxu0 %vm682_vm1, %v2788_v2  ;;  %v2791_v5 = vld [vmem:[%s2925_s22 + $0x108] sm:$0xff]   ;;  %v2793_v7 = vld [vmem:[%s2925_s22 + $0x110] sm:$0xff]  }
  0x13   : > { %2696 = vmatprep.mubr.msk.bf16.mxu1 %vm682_vm1, %v2789_v3  ;;  %2633 = vmatmul.mubr.msk.bf16.vlgmr.msra.gmra.mrb[0].mxu0 %vm682_vm1, %v2790_v4  ;;  %v2794_v8 = vld [vmem:[%s2925_s22 + $0x18] sm:$0xff]   ;;  %v2796_v10 = vld [vmem:[%s2925_s22 + $0x20] sm:$0xff]   ;;  %v2798_v12 = vld [vmem:[%s2925_s22 + $0x28] sm:$0xff]  }
  0x14   : > { %2697 = vmatmul.mubr.msk.bf16.vlgmr.msra.gmra.mrb[0].mxu1 %vm682_vm1, %v2791_v5  ;;  %2636 = vmatprep.mubr.msk.bf16.mxu0 %vm682_vm1, %v2792_v6  ;;  %v2795_v9 = vld [vmem:[%s2925_s22 + $0x118] sm:$0xff]   ;;  %v2797_v11 = vld [vmem:[%s2925_s22 + $0x120] sm:$0xff]   ;;  %v2799_v13 = vld [vmem:[%s2925_s22 + $0x128] sm:$0xff]  }
  0x15   : > { %2700 = vmatprep.mubr.msk.bf16.mxu1 %vm682_vm1, %v2793_v7  ;;  %v2800_v14 = vld [vmem:[%s2925_s22 + $0x30] sm:$0xff]   ;;  %v2802_v16 = vld [vmem:[%s2925_s22 + $0x38] sm:$0xff]   ;;  %v2804_v18 = vld [vmem:[%s2925_s22 + $0x40] sm:$0xff]  }
  0x16   : > { %v2801_v15 = vld [vmem:[%s2925_s22 + $0x130] sm:$0xff]   ;;  %v2803_v17 = vld [vmem:[%s2925_s22 + $0x138] sm:$0xff]   ;;  %v2805_v19 = vld [vmem:[%s2925_s22 + $0x140] sm:$0xff]  }
  0x17   : > { %v2806_v20 = vld [vmem:[%s2925_s22 + $0x48] sm:$0xff]   ;;  %v2808_v22 = vld [vmem:[%s2925_s22 + $0x50] sm:$0xff]   ;;  %v2810_v24 = vld [vmem:[%s2925_s22 + $0x58] sm:$0xff]  }
  0x18   : > { %v2807_v21 = vld [vmem:[%s2925_s22 + $0x148] sm:$0xff]   ;;  %v2809_v23 = vld [vmem:[%s2925_s22 + $0x150] sm:$0xff]   ;;  %v2811_v25 = vld [vmem:[%s2925_s22 + $0x158] sm:$0xff]  }
  0x19   : > { %v2812_v26 = vld [vmem:[%s2925_s22 + $0x60] sm:$0xff]   ;;  %v2814_v28 = vld [vmem:[%s2925_s22 + $0x68] sm:$0xff]   ;;  %v2816_v30 = vld [vmem:[%s2925_s22 + $0x70] sm:$0xff]  }
  0x1a   : > { %v2813_v27 = vld [vmem:[%s2925_s22 + $0x160] sm:$0xff]   ;;  %v2815_v29 = vld [vmem:[%s2925_s22 + $0x168] sm:$0xff]   ;;  %v2817_v31 = vld [vmem:[%s2925_s22 + $0x170] sm:$0xff]  }
  0x1b   : > { %2637 = vmatmul.mubr.msk.bf16.gmra.mrb[4].mxu0 %vm682_vm1, %v2794_v8  ;;  %v2818_v32 = vld [vmem:[%s2925_s22 + $0x78] sm:$0xff]   ;;  %v2820_v34 = vld [vmem:[%s2925_s22 + $0x80] sm:$0xff]   ;;  %v2822_v36 = vld [vmem:[%s2925_s22 + $0x88] sm:$0xff]  }
  0x1c   : > { %2701 = vmatmul.mubr.msk.bf16.gmra.mrb[4].mxu1 %vm682_vm1, %v2795_v9  ;;  %2640 = vmatprep.mubr.msk.bf16.mxu0 %vm682_vm1, %v2796_v10  ;;  %v2819_v33 = vld [vmem:[%s2925_s22 + $0x178] sm:$0xff]   ;;  %v2821_v35 = vld [vmem:[%s2925_s22 + $0x180] sm:$0xff]   ;;  %v2823_v37 = vld [vmem:[%s2925_s22 + $0x188] sm:$0xff]  }
  0x1d   : > { %2704 = vmatprep.mubr.msk.bf16.mxu1 %vm682_vm1, %v2797_v11  ;;  %v2824_v38 = vld [vmem:[%s2925_s22 + $0x90] sm:$0xff]   ;;  %v2826_v40 = vld [vmem:[%s2925_s22 + $0x98] sm:$0xff]   ;;  %v2828_v42 = vld [vmem:[%s2925_s22 + $0xa0] sm:$0xff]  }
  0x1e   : > { %v2825_v39 = vld [vmem:[%s2925_s22 + $0x190] sm:$0xff]   ;;  %v2827_v41 = vld [vmem:[%s2925_s22 + $0x198] sm:$0xff]   ;;  %v2829_v43 = vld [vmem:[%s2925_s22 + $0x1a0] sm:$0xff]  }
  0x1f   : > { %v2830_v44 = vld [vmem:[%s2925_s22 + $0xa8] sm:$0xff]   ;;  %v2832_v46 = vld [vmem:[%s2925_s22 + $0xb0] sm:$0xff]   ;;  %v2834_v48 = vld [vmem:[%s2925_s22 + $0xb8] sm:$0xff]  }
  0x20   : > { %v2831_v45 = vld [vmem:[%s2925_s22 + $0x1a8] sm:$0xff]   ;;  %v2833_v47 = vld [vmem:[%s2925_s22 + $0x1b0] sm:$0xff]   ;;  %v2835_v49 = vld [vmem:[%s2925_s22 + $0x1b8] sm:$0xff]  }
  0x21   : > { %v2836_v50 = vld [vmem:[%s2925_s22 + $0xc0] sm:$0xff]   ;;  %v2838_v52 = vld [vmem:[%s2925_s22 + $0xc8] sm:$0xff]   ;;  %v2840_v54 = vld [vmem:[%s2925_s22 + $0xd0] sm:$0xff]  }
  0x22   : > { %v2837_v51 = vld [vmem:[%s2925_s22 + $0x1c0] sm:$0xff]   ;;  %v2839_v53 = vld [vmem:[%s2925_s22 + $0x1c8] sm:$0xff]   ;;  %v2841_v55 = vld [vmem:[%s2925_s22 + $0x1d0] sm:$0xff]  }
  0x23   : > { %2641 = vmatmul.mubr.msk.bf16.gmra.mrb[8].mxu0 %vm682_vm1, %v2798_v12  ;;  %v2842_v56 = vld [vmem:[%s2925_s22 + $0xd8] sm:$0xff]   ;;  %v2844_v58 = vld [vmem:[%s2925_s22 + $0xe0] sm:$0xff]   ;;  %v2846_v60 = vld [vmem:[%s2925_s22 + $0xe8] sm:$0xff]  }
  0x24   : > { %2705 = vmatmul.mubr.msk.bf16.gmra.mrb[8].mxu1 %vm682_vm1, %v2799_v13  ;;  %2644 = vmatprep.mubr.msk.bf16.mxu0 %vm682_vm1, %v2800_v14  ;;  %v2843_v57 = vld [vmem:[%s2925_s22 + $0x1d8] sm:$0xff]   ;;  %v2845_v59 = vld [vmem:[%s2925_s22 + $0x1e0] sm:$0xff]   ;;  %v2847_v61 = vld [vmem:[%s2925_s22 + $0x1e8] sm:$0xff]  }
  0x25   : > { %2708 = vmatprep.mubr.msk.bf16.mxu1 %vm682_vm1, %v2801_v15  ;;  %v2848_v62 = vld [vmem:[%s2925_s22 + $0xf0] sm:$0xff]   ;;  %v2850_v0 = vld [vmem:[%s2925_s22 + $0xf8] sm:$0xff]   ;;  %v3058_v2 = vld [vmem:[%s3462_s2] ss:$0 sm:$0xff] }
  0x26   : > { %v2849_v63 = vld [vmem:[%s2925_s22 + $0x1f0] sm:$0xff]   ;;  %v2851_v1 = vld [vmem:[%s2925_s22 + $0x1f8] sm:$0xff]  }
  0x2b   : > { %2645 = vmatmul.mubr.msk.bf16.gmra.mrb[12].mxu0 %vm682_vm1, %v2802_v16 }
  0x2c   : > { %2709 = vmatmul.mubr.msk.bf16.gmra.mrb[12].mxu1 %vm682_vm1, %v2803_v17  ;;  %2648 = vmatprep.mubr.msk.bf16.mxu0 %vm682_vm1, %v2804_v18 }
  0x2d   : > { %2712 = vmatprep.mubr.msk.bf16.mxu1 %vm682_vm1, %v2805_v19 }
  0x33   : > { %2649 = vmatmul.mubr.msk.bf16.gmra.mrb[16].mxu0 %vm682_vm1, %v2806_v20 }
  0x34   : > { %2713 = vmatmul.mubr.msk.bf16.gmra.mrb[16].mxu1 %vm682_vm1, %v2807_v21  ;;  %2652 = vmatprep.mubr.msk.bf16.mxu0 %vm682_vm1, %v2808_v22 }
  0x35   : > { %2716 = vmatprep.mubr.msk.bf16.mxu1 %vm682_vm1, %v2809_v23 }
  0x3b   : > { %2653 = vmatmul.mubr.msk.bf16.gmra.mrb[20].mxu0 %vm682_vm1, %v2810_v24 }
  0x3c   : > { %2717 = vmatmul.mubr.msk.bf16.gmra.mrb[20].mxu1 %vm682_vm1, %v2811_v25  ;;  %2656 = vmatprep.mubr.msk.bf16.mxu0 %vm682_vm1, %v2812_v26 }
  0x3d   : > { %2720 = vmatprep.mubr.msk.bf16.mxu1 %vm682_vm1, %v2813_v27 }
  0x43   : > { %2657 = vmatmul.mubr.msk.bf16.gmra.mrb[24].mxu0 %vm682_vm1, %v2814_v28 }
  0x44   : > { %2721 = vmatmul.mubr.msk.bf16.gmra.mrb[24].mxu1 %vm682_vm1, %v2815_v29  ;;  %2660 = vmatprep.mubr.msk.bf16.mxu0 %vm682_vm1, %v2816_v30 }
  0x45   : > { %2724 = vmatprep.mubr.msk.bf16.mxu1 %vm682_vm1, %v2817_v31 }
  0x4b   : > { %2661 = vmatmul.mubr.msk.bf16.gmra.mrb[28].mxu0 %vm682_vm1, %v2818_v32 }
  0x4c   : > { %2725 = vmatmul.mubr.msk.bf16.gmra.mrb[28].mxu1 %vm682_vm1, %v2819_v33  ;;  %2664 = vmatprep.mubr.msk.bf16.mxu0 %vm682_vm1, %v2820_v34 }
  0x4d   : > { %2728 = vmatprep.mubr.msk.bf16.mxu1 %vm682_vm1, %v2821_v35 }
  0x53   : > { %2665 = vmatmul.mubr.msk.bf16.gmra.mrb[32].mxu0 %vm682_vm1, %v2822_v36 }
  0x54   : > { %2729 = vmatmul.mubr.msk.bf16.gmra.mrb[32].mxu1 %vm682_vm1, %v2823_v37  ;;  %2668 = vmatprep.mubr.msk.bf16.mxu0 %vm682_vm1, %v2824_v38 }
  0x55   : > { %2732 = vmatprep.mubr.msk.bf16.mxu1 %vm682_vm1, %v2825_v39 }
  0x5b   : > { %2669 = vmatmul.mubr.msk.bf16.gmra.mrb[36].mxu0 %vm682_vm1, %v2826_v40 }
  0x5c   : > { %2733 = vmatmul.mubr.msk.bf16.gmra.mrb[36].mxu1 %vm682_vm1, %v2827_v41  ;;  %2672 = vmatprep.mubr.msk.bf16.mxu0 %vm682_vm1, %v2828_v42 }
  0x5d   : > { %2736 = vmatprep.mubr.msk.bf16.mxu1 %vm682_vm1, %v2829_v43 }
  0x63   : > { %2673 = vmatmul.mubr.msk.bf16.gmra.mrb[40].mxu0 %vm682_vm1, %v2830_v44 }
  0x64   : > { %2737 = vmatmul.mubr.msk.bf16.gmra.mrb[40].mxu1 %vm682_vm1, %v2831_v45  ;;  %2676 = vmatprep.mubr.msk.bf16.mxu0 %vm682_vm1, %v2832_v46 }
  0x65   : > { %2740 = vmatprep.mubr.msk.bf16.mxu1 %vm682_vm1, %v2833_v47 }
  0x6b   : > { %2677 = vmatmul.mubr.msk.bf16.gmra.mrb[44].mxu0 %vm682_vm1, %v2834_v48 }
  0x6c   : > { %2741 = vmatmul.mubr.msk.bf16.gmra.mrb[44].mxu1 %vm682_vm1, %v2835_v49  ;;  %2680 = vmatprep.mubr.msk.bf16.mxu0 %vm682_vm1, %v2836_v50 }
  0x6d   : > { %2744 = vmatprep.mubr.msk.bf16.mxu1 %vm682_vm1, %v2837_v51 }
  0x73   : > { %2681 = vmatmul.mubr.msk.bf16.gmra.mrb[48].mxu0 %vm682_vm1, %v2838_v52 }
  0x74   : > { %2745 = vmatmul.mubr.msk.bf16.gmra.mrb[48].mxu1 %vm682_vm1, %v2839_v53  ;;  %2684 = vmatprep.mubr.msk.bf16.mxu0 %vm682_vm1, %v2840_v54 }
  0x75   : > { %2748 = vmatprep.mubr.msk.bf16.mxu1 %vm682_vm1, %v2841_v55 }
  0x7b   : > { %2685 = vmatmul.mubr.msk.bf16.gmra.mrb[52].mxu0 %vm682_vm1, %v2842_v56 }
  0x7c   : > { %2749 = vmatmul.mubr.msk.bf16.gmra.mrb[52].mxu1 %vm682_vm1, %v2843_v57  ;;  %2688 = vmatprep.mubr.msk.bf16.mxu0 %vm682_vm1, %v2844_v58 }
  0x7d   : > { %2752 = vmatprep.mubr.msk.bf16.mxu1 %vm682_vm1, %v2845_v59 }
  0x83   : > { %2689 = vmatmul.mubr.msk.bf16.gmra.mrb[56].mxu0 %vm682_vm1, %v2846_v60 }
  0x84   : > { %2753 = vmatmul.mubr.msk.bf16.gmra.mrb[56].mxu1 %vm682_vm1, %v2847_v61  ;;  %2692 = vmatprep.mubr.msk.bf16.mxu0 %vm682_vm1, %v2848_v62 }
  0x85   : > { %2756 = vmatprep.mubr.msk.bf16.mxu1 %vm682_vm1, %v2849_v63 }
  0x8b   : > { %2693 = vmatmul.mubr.msk.bf16.gmra.mrb[60].mxu0 %vm682_vm1, %v2850_v0 }
  0x8c   : > { %2757 = vmatmul.mubr.msk.bf16.gmra.mrb[60].mxu1 %vm682_vm1, %v2851_v1 }
  0xe6   : > { %v2634_v3 = vpop.f32.mrb[0].mxu0 }
  0xe7   : > { %v922_v4 = vadd.f32 %v2634_v3, %v3058_v2  ;;  %v2698_v5 = vpop.f32.mrb[0].mxu1  ;;  %v913_v6 = vpop.f32.mrb[1].mxu0 }
  0xe8   : > { %v1178_v7 = vadd.f32 %v2698_v5, %v3058_v2  ;;  %v914_v8 = vadd.f32 %v3058_v2, %v913_v6  ;;  %v1169_v9 = vpop.f32.mrb[1].mxu1  ;;  %v2635_v10 = vpop.f32.mrb[2].mxu0 }
  0xe9   : > { %v2439_v11 = vpack.c.bf16 %v922_v4, %v922_v4  ;;  %v1170_v12 = vadd.f32 %v3058_v2, %v1169_v9  ;;  %v925_v13 = vadd.f32 %v2635_v10, %v3058_v2  ;;  %v2699_v14 = vpop.f32.mrb[2].mxu1  ;;  %v916_v15 = vpop.f32.mrb[3].mxu0 }
  0xea   : > { %v2503_v16 = vpack.c.bf16 %v1178_v7, %v1178_v7  ;;  %v2437_v17 = vpack.c.bf16 %v914_v8, %v914_v8  ;;  %v1181_v18 = vadd.f32 %v2699_v14, %v3058_v2  ;;  %v917_v19 = vadd.f32 %v3058_v2, %v916_v15  ;;  %v1172_v20 = vpop.f32.mrb[3].mxu1 }
  0xeb   : > { %1939 = vst.msk [vmem:[%s3066_s27 + $0x8] sm:$0xf] %vm1936_vm2, %v2439_v11  ;;  %v2501_v21 = vpack.c.bf16 %v1170_v12, %v1170_v12  ;;  %v2440_v22 = vpack.c.bf16 %v925_v13, %v925_v13  ;;  %v1173_v23 = vadd.f32 %v3058_v2, %v1172_v20 }
  0xec   : > { %2003 = vst.msk [vmem:[%s3066_s27 + $0x108] sm:$0xf] %vm1936_vm2, %v2503_v16  ;;  %1937 = vst.msk [vmem:[%s3066_s27] sm:$0xf] %vm1936_vm2, %v2437_v17  ;;  %v2504_v24 = vpack.c.bf16 %v1181_v18, %v1181_v18  ;;  %v2438_v25 = vpack.c.bf16 %v917_v19, %v917_v19 }
  0xed   : > { %2001 = vst.msk [vmem:[%s3066_s27 + $0x100] sm:$0xf] %vm1936_vm2, %v2501_v21  ;;  %1940 = vst.msk [vmem:[%s3066_s27 + $0xc] sm:$0xf] %vm1936_vm2, %v2440_v22  ;;  %v2502_v26 = vpack.c.bf16 %v1173_v23, %v1173_v23 }
  0xee   : > { %2004 = vst.msk [vmem:[%s3066_s27 + $0x10c] sm:$0xf] %vm1936_vm2, %v2504_v24  ;;  %1938 = vst.msk [vmem:[%s3066_s27 + $0x4] sm:$0xf] %vm1936_vm2, %v2438_v25  ;;  %v2638_v27 = vpop.f32.mrb[4].mxu0 }
  0xef   : > { %2002 = vst.msk [vmem:[%s3066_s27 + $0x104] sm:$0xf] %vm1936_vm2, %v2502_v26  ;;  %v938_v28 = vadd.f32 %v2638_v27, %v3058_v2  ;;  %v2702_v29 = vpop.f32.mrb[4].mxu1  ;;  %v929_v30 = vpop.f32.mrb[5].mxu0 }
  0xf0   : > { %v1194_v31 = vadd.f32 %v2702_v29, %v3058_v2  ;;  %v930_v32 = vadd.f32 %v3058_v2, %v929_v30  ;;  %v1185_v33 = vpop.f32.mrb[5].mxu1  ;;  %v2639_v34 = vpop.f32.mrb[6].mxu0 }
  0xf1   : > { %v2443_v35 = vpack.c.bf16 %v938_v28, %v938_v28  ;;  %v1186_v36 = vadd.f32 %v3058_v2, %v1185_v33  ;;  %v941_v37 = vadd.f32 %v2639_v34, %v3058_v2  ;;  %v2703_v38 = vpop.f32.mrb[6].mxu1  ;;  %v932_v39 = vpop.f32.mrb[7].mxu0 }
  0xf2   : > { %v2507_v40 = vpack.c.bf16 %v1194_v31, %v1194_v31  ;;  %v2441_v41 = vpack.c.bf16 %v930_v32, %v930_v32  ;;  %v1197_v42 = vadd.f32 %v2703_v38, %v3058_v2  ;;  %v933_v43 = vadd.f32 %v3058_v2, %v932_v39  ;;  %v1188_v44 = vpop.f32.mrb[7].mxu1 }
  0xf3   : > { %1943 = vst.msk [vmem:[%s3066_s27 + $0x18] sm:$0xf] %vm1936_vm2, %v2443_v35  ;;  %v2505_v45 = vpack.c.bf16 %v1186_v36, %v1186_v36  ;;  %v2444_v46 = vpack.c.bf16 %v941_v37, %v941_v37  ;;  %v1189_v47 = vadd.f32 %v3058_v2, %v1188_v44 }
  0xf4   : > { %2007 = vst.msk [vmem:[%s3066_s27 + $0x118] sm:$0xf] %vm1936_vm2, %v2507_v40  ;;  %1941 = vst.msk [vmem:[%s3066_s27 + $0x10] sm:$0xf] %vm1936_vm2, %v2441_v41  ;;  %v2508_v48 = vpack.c.bf16 %v1197_v42, %v1197_v42  ;;  %v2442_v49 = vpack.c.bf16 %v933_v43, %v933_v43 }
  0xf5   : > { %2005 = vst.msk [vmem:[%s3066_s27 + $0x110] sm:$0xf] %vm1936_vm2, %v2505_v45  ;;  %1944 = vst.msk [vmem:[%s3066_s27 + $0x1c] sm:$0xf] %vm1936_vm2, %v2444_v46  ;;  %v2506_v50 = vpack.c.bf16 %v1189_v47, %v1189_v47 }
  0xf6   : > { %2008 = vst.msk [vmem:[%s3066_s27 + $0x11c] sm:$0xf] %vm1936_vm2, %v2508_v48  ;;  %1942 = vst.msk [vmem:[%s3066_s27 + $0x14] sm:$0xf] %vm1936_vm2, %v2442_v49  ;;  %v2642_v51 = vpop.f32.mrb[8].mxu0 }
  0xf7   : > { %2006 = vst.msk [vmem:[%s3066_s27 + $0x114] sm:$0xf] %vm1936_vm2, %v2506_v50  ;;  %v954_v52 = vadd.f32 %v2642_v51, %v3058_v2  ;;  %v2706_v53 = vpop.f32.mrb[8].mxu1  ;;  %v945_v54 = vpop.f32.mrb[9].mxu0 }
  0xf8   : > { %v1210_v55 = vadd.f32 %v2706_v53, %v3058_v2  ;;  %v946_v56 = vadd.f32 %v3058_v2, %v945_v54  ;;  %v1201_v57 = vpop.f32.mrb[9].mxu1  ;;  %v2643_v58 = vpop.f32.mrb[10].mxu0 }
  0xf9   : > { %v2447_v59 = vpack.c.bf16 %v954_v52, %v954_v52  ;;  %v1202_v60 = vadd.f32 %v3058_v2, %v1201_v57  ;;  %v957_v61 = vadd.f32 %v2643_v58, %v3058_v2  ;;  %v2707_v62 = vpop.f32.mrb[10].mxu1  ;;  %v948_v63 = vpop.f32.mrb[11].mxu0 }
  0xfa   : > { %v2511_v0 = vpack.c.bf16 %v1210_v55, %v1210_v55  ;;  %v2445_v1 = vpack.c.bf16 %v946_v56, %v946_v56  ;;  %v1213_v3 = vadd.f32 %v2707_v62, %v3058_v2  ;;  %v949_v4 = vadd.f32 %v3058_v2, %v948_v63  ;;  %v1204_v5 = vpop.f32.mrb[11].mxu1 }
  0xfb   : > { %1947 = vst.msk [vmem:[%s3066_s27 + $0x28] sm:$0xf] %vm1936_vm2, %v2447_v59  ;;  %v2509_v6 = vpack.c.bf16 %v1202_v60, %v1202_v60  ;;  %v2448_v7 = vpack.c.bf16 %v957_v61, %v957_v61  ;;  %v1205_v8 = vadd.f32 %v3058_v2, %v1204_v5 }
  0xfc   : > { %2011 = vst.msk [vmem:[%s3066_s27 + $0x128] sm:$0xf] %vm1936_vm2, %v2511_v0  ;;  %1945 = vst.msk [vmem:[%s3066_s27 + $0x20] sm:$0xf] %vm1936_vm2, %v2445_v1  ;;  %v2512_v9 = vpack.c.bf16 %v1213_v3, %v1213_v3  ;;  %v2446_v10 = vpack.c.bf16 %v949_v4, %v949_v4 }
  0xfd   : > { %2009 = vst.msk [vmem:[%s3066_s27 + $0x120] sm:$0xf] %vm1936_vm2, %v2509_v6  ;;  %1948 = vst.msk [vmem:[%s3066_s27 + $0x2c] sm:$0xf] %vm1936_vm2, %v2448_v7  ;;  %v2510_v11 = vpack.c.bf16 %v1205_v8, %v1205_v8 }
  0xfe   : > { %2012 = vst.msk [vmem:[%s3066_s27 + $0x12c] sm:$0xf] %vm1936_vm2, %v2512_v9  ;;  %1946 = vst.msk [vmem:[%s3066_s27 + $0x24] sm:$0xf] %vm1936_vm2, %v2446_v10  ;;  %v2646_v12 = vpop.f32.mrb[12].mxu0 }
  0xff   : > { %2010 = vst.msk [vmem:[%s3066_s27 + $0x124] sm:$0xf] %vm1936_vm2, %v2510_v11  ;;  %v970_v13 = vadd.f32 %v2646_v12, %v3058_v2  ;;  %v2710_v14 = vpop.f32.mrb[12].mxu1  ;;  %v961_v15 = vpop.f32.mrb[13].mxu0 }
 0x100   : > { %v1226_v16 = vadd.f32 %v2710_v14, %v3058_v2  ;;  %v962_v17 = vadd.f32 %v3058_v2, %v961_v15  ;;  %v1217_v18 = vpop.f32.mrb[13].mxu1  ;;  %v2647_v19 = vpop.f32.mrb[14].mxu0 }
 0x101   : > { %v2451_v20 = vpack.c.bf16 %v970_v13, %v970_v13  ;;  %v1218_v21 = vadd.f32 %v3058_v2, %v1217_v18  ;;  %v973_v22 = vadd.f32 %v2647_v19, %v3058_v2  ;;  %v2711_v23 = vpop.f32.mrb[14].mxu1  ;;  %v964_v24 = vpop.f32.mrb[15].mxu0 }
 0x102   : > { %v2515_v25 = vpack.c.bf16 %v1226_v16, %v1226_v16  ;;  %v2449_v26 = vpack.c.bf16 %v962_v17, %v962_v17  ;;  %v1229_v27 = vadd.f32 %v2711_v23, %v3058_v2  ;;  %v965_v28 = vadd.f32 %v3058_v2, %v964_v24  ;;  %v1220_v29 = vpop.f32.mrb[15].mxu1 }
 0x103   : > { %1951 = vst.msk [vmem:[%s3066_s27 + $0x38] sm:$0xf] %vm1936_vm2, %v2451_v20  ;;  %v2513_v30 = vpack.c.bf16 %v1218_v21, %v1218_v21  ;;  %v2452_v31 = vpack.c.bf16 %v973_v22, %v973_v22  ;;  %v1221_v32 = vadd.f32 %v3058_v2, %v1220_v29 }
 0x104   : > { %2015 = vst.msk [vmem:[%s3066_s27 + $0x138] sm:$0xf] %vm1936_vm2, %v2515_v25  ;;  %1949 = vst.msk [vmem:[%s3066_s27 + $0x30] sm:$0xf] %vm1936_vm2, %v2449_v26  ;;  %v2516_v33 = vpack.c.bf16 %v1229_v27, %v1229_v27  ;;  %v2450_v34 = vpack.c.bf16 %v965_v28, %v965_v28 }
 0x105   : > { %2013 = vst.msk [vmem:[%s3066_s27 + $0x130] sm:$0xf] %vm1936_vm2, %v2513_v30  ;;  %1952 = vst.msk [vmem:[%s3066_s27 + $0x3c] sm:$0xf] %vm1936_vm2, %v2452_v31  ;;  %v2514_v35 = vpack.c.bf16 %v1221_v32, %v1221_v32 }
 0x106   : > { %2016 = vst.msk [vmem:[%s3066_s27 + $0x13c] sm:$0xf] %vm1936_vm2, %v2516_v33  ;;  %1950 = vst.msk [vmem:[%s3066_s27 + $0x34] sm:$0xf] %vm1936_vm2, %v2450_v34  ;;  %v2650_v36 = vpop.f32.mrb[16].mxu0 }
 0x107   : > { %2014 = vst.msk [vmem:[%s3066_s27 + $0x134] sm:$0xf] %vm1936_vm2, %v2514_v35  ;;  %v986_v37 = vadd.f32 %v2650_v36, %v3058_v2  ;;  %v2714_v38 = vpop.f32.mrb[16].mxu1  ;;  %v977_v39 = vpop.f32.mrb[17].mxu0 }
 0x108   : > { %v1242_v40 = vadd.f32 %v2714_v38, %v3058_v2  ;;  %v978_v41 = vadd.f32 %v3058_v2, %v977_v39  ;;  %v1233_v42 = vpop.f32.mrb[17].mxu1  ;;  %v2651_v43 = vpop.f32.mrb[18].mxu0 }
 0x109   : > { %v2455_v44 = vpack.c.bf16 %v986_v37, %v986_v37  ;;  %v1234_v45 = vadd.f32 %v3058_v2, %v1233_v42  ;;  %v989_v46 = vadd.f32 %v2651_v43, %v3058_v2  ;;  %v2715_v47 = vpop.f32.mrb[18].mxu1  ;;  %v980_v48 = vpop.f32.mrb[19].mxu0 }
 0x10a   : > { %v2519_v49 = vpack.c.bf16 %v1242_v40, %v1242_v40  ;;  %v2453_v50 = vpack.c.bf16 %v978_v41, %v978_v41  ;;  %v1245_v51 = vadd.f32 %v2715_v47, %v3058_v2  ;;  %v981_v52 = vadd.f32 %v3058_v2, %v980_v48  ;;  %v1236_v53 = vpop.f32.mrb[19].mxu1 }
 0x10b   : > { %1955 = vst.msk [vmem:[%s3066_s27 + $0x48] sm:$0xf] %vm1936_vm2, %v2455_v44  ;;  %v2517_v54 = vpack.c.bf16 %v1234_v45, %v1234_v45  ;;  %v2456_v55 = vpack.c.bf16 %v989_v46, %v989_v46  ;;  %v1237_v56 = vadd.f32 %v3058_v2, %v1236_v53 }
 0x10c   : > { %2019 = vst.msk [vmem:[%s3066_s27 + $0x148] sm:$0xf] %vm1936_vm2, %v2519_v49  ;;  %1953 = vst.msk [vmem:[%s3066_s27 + $0x40] sm:$0xf] %vm1936_vm2, %v2453_v50  ;;  %v2520_v57 = vpack.c.bf16 %v1245_v51, %v1245_v51  ;;  %v2454_v58 = vpack.c.bf16 %v981_v52, %v981_v52 }
 0x10d   : > { %2017 = vst.msk [vmem:[%s3066_s27 + $0x140] sm:$0xf] %vm1936_vm2, %v2517_v54  ;;  %1956 = vst.msk [vmem:[%s3066_s27 + $0x4c] sm:$0xf] %vm1936_vm2, %v2456_v55  ;;  %v2518_v59 = vpack.c.bf16 %v1237_v56, %v1237_v56 }
 0x10e   : > { %2020 = vst.msk [vmem:[%s3066_s27 + $0x14c] sm:$0xf] %vm1936_vm2, %v2520_v57  ;;  %1954 = vst.msk [vmem:[%s3066_s27 + $0x44] sm:$0xf] %vm1936_vm2, %v2454_v58  ;;  %v2654_v60 = vpop.f32.mrb[20].mxu0 }
 0x10f   : > { %2018 = vst.msk [vmem:[%s3066_s27 + $0x144] sm:$0xf] %vm1936_vm2, %v2518_v59  ;;  %v1002_v61 = vadd.f32 %v2654_v60, %v3058_v2  ;;  %v2718_v62 = vpop.f32.mrb[20].mxu1  ;;  %v993_v63 = vpop.f32.mrb[21].mxu0 }
 0x110   : > { %v1258_v0 = vadd.f32 %v2718_v62, %v3058_v2  ;;  %v994_v1 = vadd.f32 %v3058_v2, %v993_v63  ;;  %v1249_v3 = vpop.f32.mrb[21].mxu1  ;;  %v2655_v4 = vpop.f32.mrb[22].mxu0 }
 0x111   : > { %v2459_v5 = vpack.c.bf16 %v1002_v61, %v1002_v61  ;;  %v1250_v6 = vadd.f32 %v3058_v2, %v1249_v3  ;;  %v1005_v7 = vadd.f32 %v2655_v4, %v3058_v2  ;;  %v2719_v8 = vpop.f32.mrb[22].mxu1  ;;  %v996_v9 = vpop.f32.mrb[23].mxu0 }
 0x112   : > { %v2523_v10 = vpack.c.bf16 %v1258_v0, %v1258_v0  ;;  %v2457_v11 = vpack.c.bf16 %v994_v1, %v994_v1  ;;  %v1261_v12 = vadd.f32 %v2719_v8, %v3058_v2  ;;  %v997_v13 = vadd.f32 %v3058_v2, %v996_v9  ;;  %v1252_v14 = vpop.f32.mrb[23].mxu1 }
 0x113   : > { %1959 = vst.msk [vmem:[%s3066_s27 + $0x58] sm:$0xf] %vm1936_vm2, %v2459_v5  ;;  %v2521_v15 = vpack.c.bf16 %v1250_v6, %v1250_v6  ;;  %v2460_v16 = vpack.c.bf16 %v1005_v7, %v1005_v7  ;;  %v1253_v17 = vadd.f32 %v3058_v2, %v1252_v14 }
 0x114   : > { %2023 = vst.msk [vmem:[%s3066_s27 + $0x158] sm:$0xf] %vm1936_vm2, %v2523_v10  ;;  %1957 = vst.msk [vmem:[%s3066_s27 + $0x50] sm:$0xf] %vm1936_vm2, %v2457_v11  ;;  %v2524_v18 = vpack.c.bf16 %v1261_v12, %v1261_v12  ;;  %v2458_v19 = vpack.c.bf16 %v997_v13, %v997_v13 }
 0x115   : > { %2021 = vst.msk [vmem:[%s3066_s27 + $0x150] sm:$0xf] %vm1936_vm2, %v2521_v15  ;;  %1960 = vst.msk [vmem:[%s3066_s27 + $0x5c] sm:$0xf] %vm1936_vm2, %v2460_v16  ;;  %v2522_v20 = vpack.c.bf16 %v1253_v17, %v1253_v17 }
 0x116   : > { %2024 = vst.msk [vmem:[%s3066_s27 + $0x15c] sm:$0xf] %vm1936_vm2, %v2524_v18  ;;  %1958 = vst.msk [vmem:[%s3066_s27 + $0x54] sm:$0xf] %vm1936_vm2, %v2458_v19  ;;  %v2658_v21 = vpop.f32.mrb[24].mxu0 }
 0x117   : > { %2022 = vst.msk [vmem:[%s3066_s27 + $0x154] sm:$0xf] %vm1936_vm2, %v2522_v20  ;;  %v1018_v22 = vadd.f32 %v2658_v21, %v3058_v2  ;;  %v2722_v23 = vpop.f32.mrb[24].mxu1  ;;  %v1009_v24 = vpop.f32.mrb[25].mxu0 }
 0x118   : > { %v1274_v25 = vadd.f32 %v2722_v23, %v3058_v2  ;;  %v1010_v26 = vadd.f32 %v3058_v2, %v1009_v24  ;;  %v1265_v27 = vpop.f32.mrb[25].mxu1  ;;  %v2659_v28 = vpop.f32.mrb[26].mxu0 }
 0x119   : > { %v2463_v29 = vpack.c.bf16 %v1018_v22, %v1018_v22  ;;  %v1266_v30 = vadd.f32 %v3058_v2, %v1265_v27  ;;  %v1021_v31 = vadd.f32 %v2659_v28, %v3058_v2  ;;  %v2723_v32 = vpop.f32.mrb[26].mxu1  ;;  %v1012_v33 = vpop.f32.mrb[27].mxu0 }
 0x11a   : > { %v2527_v34 = vpack.c.bf16 %v1274_v25, %v1274_v25  ;;  %v2461_v35 = vpack.c.bf16 %v1010_v26, %v1010_v26  ;;  %v1277_v36 = vadd.f32 %v2723_v32, %v3058_v2  ;;  %v1013_v37 = vadd.f32 %v3058_v2, %v1012_v33  ;;  %v1268_v38 = vpop.f32.mrb[27].mxu1 }
 0x11b   : > { %1963 = vst.msk [vmem:[%s3066_s27 + $0x68] sm:$0xf] %vm1936_vm2, %v2463_v29  ;;  %v2525_v39 = vpack.c.bf16 %v1266_v30, %v1266_v30  ;;  %v2464_v40 = vpack.c.bf16 %v1021_v31, %v1021_v31  ;;  %v1269_v41 = vadd.f32 %v3058_v2, %v1268_v38 }
 0x11c   : > { %2027 = vst.msk [vmem:[%s3066_s27 + $0x168] sm:$0xf] %vm1936_vm2, %v2527_v34  ;;  %1961 = vst.msk [vmem:[%s3066_s27 + $0x60] sm:$0xf] %vm1936_vm2, %v2461_v35  ;;  %v2528_v42 = vpack.c.bf16 %v1277_v36, %v1277_v36  ;;  %v2462_v43 = vpack.c.bf16 %v1013_v37, %v1013_v37 }
 0x11d   : > { %2025 = vst.msk [vmem:[%s3066_s27 + $0x160] sm:$0xf] %vm1936_vm2, %v2525_v39  ;;  %1964 = vst.msk [vmem:[%s3066_s27 + $0x6c] sm:$0xf] %vm1936_vm2, %v2464_v40  ;;  %v2526_v44 = vpack.c.bf16 %v1269_v41, %v1269_v41 }
 0x11e   : > { %2028 = vst.msk [vmem:[%s3066_s27 + $0x16c] sm:$0xf] %vm1936_vm2, %v2528_v42  ;;  %1962 = vst.msk [vmem:[%s3066_s27 + $0x64] sm:$0xf] %vm1936_vm2, %v2462_v43  ;;  %v2662_v45 = vpop.f32.mrb[28].mxu0 }
 0x11f   : > { %2026 = vst.msk [vmem:[%s3066_s27 + $0x164] sm:$0xf] %vm1936_vm2, %v2526_v44  ;;  %v1034_v46 = vadd.f32 %v2662_v45, %v3058_v2  ;;  %v2726_v47 = vpop.f32.mrb[28].mxu1  ;;  %v1025_v48 = vpop.f32.mrb[29].mxu0 }
 0x120   : > { %v1290_v49 = vadd.f32 %v2726_v47, %v3058_v2  ;;  %v1026_v50 = vadd.f32 %v3058_v2, %v1025_v48  ;;  %v1281_v51 = vpop.f32.mrb[29].mxu1  ;;  %v2663_v52 = vpop.f32.mrb[30].mxu0 }
 0x121   : > { %v2467_v53 = vpack.c.bf16 %v1034_v46, %v1034_v46  ;;  %v1282_v54 = vadd.f32 %v3058_v2, %v1281_v51  ;;  %v1037_v55 = vadd.f32 %v2663_v52, %v3058_v2  ;;  %v2727_v56 = vpop.f32.mrb[30].mxu1  ;;  %v1028_v57 = vpop.f32.mrb[31].mxu0 }
 0x122   : > { %v2531_v58 = vpack.c.bf16 %v1290_v49, %v1290_v49  ;;  %v2465_v59 = vpack.c.bf16 %v1026_v50, %v1026_v50  ;;  %v1293_v60 = vadd.f32 %v2727_v56, %v3058_v2  ;;  %v1029_v61 = vadd.f32 %v3058_v2, %v1028_v57  ;;  %v1284_v62 = vpop.f32.mrb[31].mxu1 }
 0x123   : > { %1967 = vst.msk [vmem:[%s3066_s27 + $0x78] sm:$0xf] %vm1936_vm2, %v2467_v53  ;;  %v2529_v63 = vpack.c.bf16 %v1282_v54, %v1282_v54  ;;  %v2468_v0 = vpack.c.bf16 %v1037_v55, %v1037_v55  ;;  %v1285_v1 = vadd.f32 %v3058_v2, %v1284_v62 }
 0x124   : > { %2031 = vst.msk [vmem:[%s3066_s27 + $0x178] sm:$0xf] %vm1936_vm2, %v2531_v58  ;;  %1965 = vst.msk [vmem:[%s3066_s27 + $0x70] sm:$0xf] %vm1936_vm2, %v2465_v59  ;;  %v2532_v3 = vpack.c.bf16 %v1293_v60, %v1293_v60  ;;  %v2466_v4 = vpack.c.bf16 %v1029_v61, %v1029_v61 }
 0x125   : > { %2029 = vst.msk [vmem:[%s3066_s27 + $0x170] sm:$0xf] %vm1936_vm2, %v2529_v63  ;;  %1968 = vst.msk [vmem:[%s3066_s27 + $0x7c] sm:$0xf] %vm1936_vm2, %v2468_v0  ;;  %v2530_v5 = vpack.c.bf16 %v1285_v1, %v1285_v1 }
 0x126   : > { %2032 = vst.msk [vmem:[%s3066_s27 + $0x17c] sm:$0xf] %vm1936_vm2, %v2532_v3  ;;  %1966 = vst.msk [vmem:[%s3066_s27 + $0x74] sm:$0xf] %vm1936_vm2, %v2466_v4  ;;  %v2666_v6 = vpop.f32.mrb[32].mxu0 }
 0x127   : > { %2030 = vst.msk [vmem:[%s3066_s27 + $0x174] sm:$0xf] %vm1936_vm2, %v2530_v5  ;;  %v1050_v7 = vadd.f32 %v2666_v6, %v3058_v2  ;;  %v2730_v8 = vpop.f32.mrb[32].mxu1  ;;  %v1041_v9 = vpop.f32.mrb[33].mxu0 }
 0x128   : > { %v1306_v10 = vadd.f32 %v2730_v8, %v3058_v2  ;;  %v1042_v11 = vadd.f32 %v3058_v2, %v1041_v9  ;;  %v1297_v12 = vpop.f32.mrb[33].mxu1  ;;  %v2667_v13 = vpop.f32.mrb[34].mxu0 }
 0x129   : > { %v2471_v14 = vpack.c.bf16 %v1050_v7, %v1050_v7  ;;  %v1298_v15 = vadd.f32 %v3058_v2, %v1297_v12  ;;  %v1053_v16 = vadd.f32 %v2667_v13, %v3058_v2  ;;  %v2731_v17 = vpop.f32.mrb[34].mxu1  ;;  %v1044_v18 = vpop.f32.mrb[35].mxu0 }
 0x12a   : > { %v2535_v19 = vpack.c.bf16 %v1306_v10, %v1306_v10  ;;  %v2469_v20 = vpack.c.bf16 %v1042_v11, %v1042_v11  ;;  %v1309_v21 = vadd.f32 %v2731_v17, %v3058_v2  ;;  %v1045_v22 = vadd.f32 %v3058_v2, %v1044_v18  ;;  %v1300_v23 = vpop.f32.mrb[35].mxu1 }
 0x12b   : > { %1971 = vst.msk [vmem:[%s3066_s27 + $0x88] sm:$0xf] %vm1936_vm2, %v2471_v14  ;;  %v2533_v24 = vpack.c.bf16 %v1298_v15, %v1298_v15  ;;  %v2472_v25 = vpack.c.bf16 %v1053_v16, %v1053_v16  ;;  %v1301_v26 = vadd.f32 %v3058_v2, %v1300_v23 }
 0x12c   : > { %2035 = vst.msk [vmem:[%s3066_s27 + $0x188] sm:$0xf] %vm1936_vm2, %v2535_v19  ;;  %1969 = vst.msk [vmem:[%s3066_s27 + $0x80] sm:$0xf] %vm1936_vm2, %v2469_v20  ;;  %v2536_v27 = vpack.c.bf16 %v1309_v21, %v1309_v21  ;;  %v2470_v28 = vpack.c.bf16 %v1045_v22, %v1045_v22 }
 0x12d   : > { %2033 = vst.msk [vmem:[%s3066_s27 + $0x180] sm:$0xf] %vm1936_vm2, %v2533_v24  ;;  %1972 = vst.msk [vmem:[%s3066_s27 + $0x8c] sm:$0xf] %vm1936_vm2, %v2472_v25  ;;  %v2534_v29 = vpack.c.bf16 %v1301_v26, %v1301_v26 }
 0x12e   : > { %2036 = vst.msk [vmem:[%s3066_s27 + $0x18c] sm:$0xf] %vm1936_vm2, %v2536_v27  ;;  %1970 = vst.msk [vmem:[%s3066_s27 + $0x84] sm:$0xf] %vm1936_vm2, %v2470_v28  ;;  %v2670_v30 = vpop.f32.mrb[36].mxu0 }
 0x12f   : > { %2034 = vst.msk [vmem:[%s3066_s27 + $0x184] sm:$0xf] %vm1936_vm2, %v2534_v29  ;;  %v1066_v31 = vadd.f32 %v2670_v30, %v3058_v2  ;;  %v2734_v32 = vpop.f32.mrb[36].mxu1  ;;  %v1057_v33 = vpop.f32.mrb[37].mxu0 }
 0x130   : > { %v1322_v34 = vadd.f32 %v2734_v32, %v3058_v2  ;;  %v1058_v35 = vadd.f32 %v3058_v2, %v1057_v33  ;;  %v1313_v36 = vpop.f32.mrb[37].mxu1  ;;  %v2671_v37 = vpop.f32.mrb[38].mxu0 }
 0x131   : > { %v2475_v38 = vpack.c.bf16 %v1066_v31, %v1066_v31  ;;  %v1314_v39 = vadd.f32 %v3058_v2, %v1313_v36  ;;  %v1069_v40 = vadd.f32 %v2671_v37, %v3058_v2  ;;  %v2735_v41 = vpop.f32.mrb[38].mxu1  ;;  %v1060_v42 = vpop.f32.mrb[39].mxu0 }
 0x132   : > { %v2539_v43 = vpack.c.bf16 %v1322_v34, %v1322_v34  ;;  %v2473_v44 = vpack.c.bf16 %v1058_v35, %v1058_v35  ;;  %v1325_v45 = vadd.f32 %v2735_v41, %v3058_v2  ;;  %v1061_v46 = vadd.f32 %v3058_v2, %v1060_v42  ;;  %v1316_v47 = vpop.f32.mrb[39].mxu1 }
 0x133   : > { %1975 = vst.msk [vmem:[%s3066_s27 + $0x98] sm:$0xf] %vm1936_vm2, %v2475_v38  ;;  %v2537_v48 = vpack.c.bf16 %v1314_v39, %v1314_v39  ;;  %v2476_v49 = vpack.c.bf16 %v1069_v40, %v1069_v40  ;;  %v1317_v50 = vadd.f32 %v3058_v2, %v1316_v47 }
 0x134   : > { %2039 = vst.msk [vmem:[%s3066_s27 + $0x198] sm:$0xf] %vm1936_vm2, %v2539_v43  ;;  %1973 = vst.msk [vmem:[%s3066_s27 + $0x90] sm:$0xf] %vm1936_vm2, %v2473_v44  ;;  %v2540_v51 = vpack.c.bf16 %v1325_v45, %v1325_v45  ;;  %v2474_v52 = vpack.c.bf16 %v1061_v46, %v1061_v46 }
 0x135   : > { %2037 = vst.msk [vmem:[%s3066_s27 + $0x190] sm:$0xf] %vm1936_vm2, %v2537_v48  ;;  %1976 = vst.msk [vmem:[%s3066_s27 + $0x9c] sm:$0xf] %vm1936_vm2, %v2476_v49  ;;  %v2538_v53 = vpack.c.bf16 %v1317_v50, %v1317_v50 }
 0x136   : > { %2040 = vst.msk [vmem:[%s3066_s27 + $0x19c] sm:$0xf] %vm1936_vm2, %v2540_v51  ;;  %1974 = vst.msk [vmem:[%s3066_s27 + $0x94] sm:$0xf] %vm1936_vm2, %v2474_v52  ;;  %v2674_v54 = vpop.f32.mrb[40].mxu0 }
 0x137   : > { %2038 = vst.msk [vmem:[%s3066_s27 + $0x194] sm:$0xf] %vm1936_vm2, %v2538_v53  ;;  %v1082_v55 = vadd.f32 %v2674_v54, %v3058_v2  ;;  %v2738_v56 = vpop.f32.mrb[40].mxu1  ;;  %v1073_v57 = vpop.f32.mrb[41].mxu0 }
 0x138   : > { %v1338_v58 = vadd.f32 %v2738_v56, %v3058_v2  ;;  %v1074_v59 = vadd.f32 %v3058_v2, %v1073_v57  ;;  %v1329_v60 = vpop.f32.mrb[41].mxu1  ;;  %v2675_v61 = vpop.f32.mrb[42].mxu0 }
 0x139   : > { %v2479_v62 = vpack.c.bf16 %v1082_v55, %v1082_v55  ;;  %v1330_v63 = vadd.f32 %v3058_v2, %v1329_v60  ;;  %v1085_v0 = vadd.f32 %v2675_v61, %v3058_v2  ;;  %v2739_v1 = vpop.f32.mrb[42].mxu1  ;;  %v1076_v3 = vpop.f32.mrb[43].mxu0 }
 0x13a   : > { %v2543_v4 = vpack.c.bf16 %v1338_v58, %v1338_v58  ;;  %v2477_v5 = vpack.c.bf16 %v1074_v59, %v1074_v59  ;;  %v1341_v6 = vadd.f32 %v2739_v1, %v3058_v2  ;;  %v1077_v7 = vadd.f32 %v3058_v2, %v1076_v3  ;;  %v1332_v8 = vpop.f32.mrb[43].mxu1 }
 0x13b   : > { %1979 = vst.msk [vmem:[%s3066_s27 + $0xa8] sm:$0xf] %vm1936_vm2, %v2479_v62  ;;  %v2541_v9 = vpack.c.bf16 %v1330_v63, %v1330_v63  ;;  %v2480_v10 = vpack.c.bf16 %v1085_v0, %v1085_v0  ;;  %v1333_v11 = vadd.f32 %v3058_v2, %v1332_v8 }
 0x13c   : > { %2043 = vst.msk [vmem:[%s3066_s27 + $0x1a8] sm:$0xf] %vm1936_vm2, %v2543_v4  ;;  %1977 = vst.msk [vmem:[%s3066_s27 + $0xa0] sm:$0xf] %vm1936_vm2, %v2477_v5  ;;  %v2544_v12 = vpack.c.bf16 %v1341_v6, %v1341_v6  ;;  %v2478_v13 = vpack.c.bf16 %v1077_v7, %v1077_v7 }
 0x13d   : > { %2041 = vst.msk [vmem:[%s3066_s27 + $0x1a0] sm:$0xf] %vm1936_vm2, %v2541_v9  ;;  %1980 = vst.msk [vmem:[%s3066_s27 + $0xac] sm:$0xf] %vm1936_vm2, %v2480_v10  ;;  %v2542_v14 = vpack.c.bf16 %v1333_v11, %v1333_v11 }
 0x13e   : > { %2044 = vst.msk [vmem:[%s3066_s27 + $0x1ac] sm:$0xf] %vm1936_vm2, %v2544_v12  ;;  %1978 = vst.msk [vmem:[%s3066_s27 + $0xa4] sm:$0xf] %vm1936_vm2, %v2478_v13  ;;  %v2678_v15 = vpop.f32.mrb[44].mxu0 }
 0x13f   : > { %2042 = vst.msk [vmem:[%s3066_s27 + $0x1a4] sm:$0xf] %vm1936_vm2, %v2542_v14  ;;  %v1098_v16 = vadd.f32 %v2678_v15, %v3058_v2  ;;  %v2742_v17 = vpop.f32.mrb[44].mxu1  ;;  %v1089_v18 = vpop.f32.mrb[45].mxu0 }
 0x140   : > { %v1354_v19 = vadd.f32 %v2742_v17, %v3058_v2  ;;  %v1090_v20 = vadd.f32 %v3058_v2, %v1089_v18  ;;  %v1345_v21 = vpop.f32.mrb[45].mxu1  ;;  %v2679_v22 = vpop.f32.mrb[46].mxu0 }
 0x141   : > { %v2483_v23 = vpack.c.bf16 %v1098_v16, %v1098_v16  ;;  %v1346_v24 = vadd.f32 %v3058_v2, %v1345_v21  ;;  %v1101_v25 = vadd.f32 %v2679_v22, %v3058_v2  ;;  %v2743_v26 = vpop.f32.mrb[46].mxu1  ;;  %v1092_v27 = vpop.f32.mrb[47].mxu0 }
 0x142   : > { %v2547_v28 = vpack.c.bf16 %v1354_v19, %v1354_v19  ;;  %v2481_v29 = vpack.c.bf16 %v1090_v20, %v1090_v20  ;;  %v1357_v30 = vadd.f32 %v2743_v26, %v3058_v2  ;;  %v1093_v31 = vadd.f32 %v3058_v2, %v1092_v27  ;;  %v1348_v32 = vpop.f32.mrb[47].mxu1 }
 0x143   : > { %1983 = vst.msk [vmem:[%s3066_s27 + $0xb8] sm:$0xf] %vm1936_vm2, %v2483_v23  ;;  %v2545_v33 = vpack.c.bf16 %v1346_v24, %v1346_v24  ;;  %v2484_v34 = vpack.c.bf16 %v1101_v25, %v1101_v25  ;;  %v1349_v35 = vadd.f32 %v3058_v2, %v1348_v32 }
 0x144   : > { %2047 = vst.msk [vmem:[%s3066_s27 + $0x1b8] sm:$0xf] %vm1936_vm2, %v2547_v28  ;;  %1981 = vst.msk [vmem:[%s3066_s27 + $0xb0] sm:$0xf] %vm1936_vm2, %v2481_v29  ;;  %v2548_v36 = vpack.c.bf16 %v1357_v30, %v1357_v30  ;;  %v2482_v37 = vpack.c.bf16 %v1093_v31, %v1093_v31 }
 0x145   : > { %2045 = vst.msk [vmem:[%s3066_s27 + $0x1b0] sm:$0xf] %vm1936_vm2, %v2545_v33  ;;  %1984 = vst.msk [vmem:[%s3066_s27 + $0xbc] sm:$0xf] %vm1936_vm2, %v2484_v34  ;;  %v2546_v38 = vpack.c.bf16 %v1349_v35, %v1349_v35 }
 0x146   : > { %2048 = vst.msk [vmem:[%s3066_s27 + $0x1bc] sm:$0xf] %vm1936_vm2, %v2548_v36  ;;  %1982 = vst.msk [vmem:[%s3066_s27 + $0xb4] sm:$0xf] %vm1936_vm2, %v2482_v37  ;;  %v2682_v39 = vpop.f32.mrb[48].mxu0 }
 0x147   : > { %2046 = vst.msk [vmem:[%s3066_s27 + $0x1b4] sm:$0xf] %vm1936_vm2, %v2546_v38  ;;  %v1114_v40 = vadd.f32 %v2682_v39, %v3058_v2  ;;  %v2746_v41 = vpop.f32.mrb[48].mxu1  ;;  %v1105_v42 = vpop.f32.mrb[49].mxu0 }
 0x148   : > { %v1370_v43 = vadd.f32 %v2746_v41, %v3058_v2  ;;  %v1106_v44 = vadd.f32 %v3058_v2, %v1105_v42  ;;  %v1361_v45 = vpop.f32.mrb[49].mxu1  ;;  %v2683_v46 = vpop.f32.mrb[50].mxu0 }
 0x149   : > { %v2487_v47 = vpack.c.bf16 %v1114_v40, %v1114_v40  ;;  %v1362_v48 = vadd.f32 %v3058_v2, %v1361_v45  ;;  %v1117_v49 = vadd.f32 %v2683_v46, %v3058_v2  ;;  %v2747_v50 = vpop.f32.mrb[50].mxu1  ;;  %v1108_v51 = vpop.f32.mrb[51].mxu0 }
 0x14a   : > { %v2551_v52 = vpack.c.bf16 %v1370_v43, %v1370_v43  ;;  %v2485_v53 = vpack.c.bf16 %v1106_v44, %v1106_v44  ;;  %v1373_v54 = vadd.f32 %v2747_v50, %v3058_v2  ;;  %v1109_v55 = vadd.f32 %v3058_v2, %v1108_v51  ;;  %v1364_v56 = vpop.f32.mrb[51].mxu1 }
 0x14b   : > { %1987 = vst.msk [vmem:[%s3066_s27 + $0xc8] sm:$0xf] %vm1936_vm2, %v2487_v47  ;;  %v2549_v57 = vpack.c.bf16 %v1362_v48, %v1362_v48  ;;  %v2488_v58 = vpack.c.bf16 %v1117_v49, %v1117_v49  ;;  %v1365_v59 = vadd.f32 %v3058_v2, %v1364_v56 }
 0x14c   : > { %2051 = vst.msk [vmem:[%s3066_s27 + $0x1c8] sm:$0xf] %vm1936_vm2, %v2551_v52  ;;  %1985 = vst.msk [vmem:[%s3066_s27 + $0xc0] sm:$0xf] %vm1936_vm2, %v2485_v53  ;;  %v2552_v60 = vpack.c.bf16 %v1373_v54, %v1373_v54  ;;  %v2486_v61 = vpack.c.bf16 %v1109_v55, %v1109_v55 }
 0x14d   : > { %2049 = vst.msk [vmem:[%s3066_s27 + $0x1c0] sm:$0xf] %vm1936_vm2, %v2549_v57  ;;  %1988 = vst.msk [vmem:[%s3066_s27 + $0xcc] sm:$0xf] %vm1936_vm2, %v2488_v58  ;;  %v2550_v62 = vpack.c.bf16 %v1365_v59, %v1365_v59 }
 0x14e   : > { %2052 = vst.msk [vmem:[%s3066_s27 + $0x1cc] sm:$0xf] %vm1936_vm2, %v2552_v60  ;;  %1986 = vst.msk [vmem:[%s3066_s27 + $0xc4] sm:$0xf] %vm1936_vm2, %v2486_v61  ;;  %v2686_v63 = vpop.f32.mrb[52].mxu0 }
 0x14f   : > { %2050 = vst.msk [vmem:[%s3066_s27 + $0x1c4] sm:$0xf] %vm1936_vm2, %v2550_v62  ;;  %v1130_v0 = vadd.f32 %v2686_v63, %v3058_v2  ;;  %v2750_v1 = vpop.f32.mrb[52].mxu1  ;;  %v1121_v3 = vpop.f32.mrb[53].mxu0 }
 0x150   : > { %v1386_v4 = vadd.f32 %v2750_v1, %v3058_v2  ;;  %v1122_v5 = vadd.f32 %v3058_v2, %v1121_v3  ;;  %v1377_v6 = vpop.f32.mrb[53].mxu1  ;;  %v2687_v7 = vpop.f32.mrb[54].mxu0 }
 0x151   : > { %v2491_v8 = vpack.c.bf16 %v1130_v0, %v1130_v0  ;;  %v1378_v9 = vadd.f32 %v3058_v2, %v1377_v6  ;;  %v1133_v10 = vadd.f32 %v2687_v7, %v3058_v2  ;;  %v2751_v11 = vpop.f32.mrb[54].mxu1  ;;  %v1124_v12 = vpop.f32.mrb[55].mxu0 }
 0x152   : > { %v2555_v13 = vpack.c.bf16 %v1386_v4, %v1386_v4  ;;  %v2489_v14 = vpack.c.bf16 %v1122_v5, %v1122_v5  ;;  %v1389_v15 = vadd.f32 %v2751_v11, %v3058_v2  ;;  %v1125_v16 = vadd.f32 %v3058_v2, %v1124_v12  ;;  %v1380_v17 = vpop.f32.mrb[55].mxu1 }
 0x153   : > { %1991 = vst.msk [vmem:[%s3066_s27 + $0xd8] sm:$0xf] %vm1936_vm2, %v2491_v8  ;;  %v2553_v18 = vpack.c.bf16 %v1378_v9, %v1378_v9  ;;  %v2492_v19 = vpack.c.bf16 %v1133_v10, %v1133_v10  ;;  %v1381_v20 = vadd.f32 %v3058_v2, %v1380_v17 }
 0x154   : > { %2055 = vst.msk [vmem:[%s3066_s27 + $0x1d8] sm:$0xf] %vm1936_vm2, %v2555_v13  ;;  %1989 = vst.msk [vmem:[%s3066_s27 + $0xd0] sm:$0xf] %vm1936_vm2, %v2489_v14  ;;  %v2556_v21 = vpack.c.bf16 %v1389_v15, %v1389_v15  ;;  %v2490_v22 = vpack.c.bf16 %v1125_v16, %v1125_v16 }
 0x155   : > { %2053 = vst.msk [vmem:[%s3066_s27 + $0x1d0] sm:$0xf] %vm1936_vm2, %v2553_v18  ;;  %1992 = vst.msk [vmem:[%s3066_s27 + $0xdc] sm:$0xf] %vm1936_vm2, %v2492_v19  ;;  %v2554_v23 = vpack.c.bf16 %v1381_v20, %v1381_v20 }
 0x156   : > { %2056 = vst.msk [vmem:[%s3066_s27 + $0x1dc] sm:$0xf] %vm1936_vm2, %v2556_v21  ;;  %1990 = vst.msk [vmem:[%s3066_s27 + $0xd4] sm:$0xf] %vm1936_vm2, %v2490_v22  ;;  %v2690_v24 = vpop.f32.mrb[56].mxu0 }
 0x157   : > { %2054 = vst.msk [vmem:[%s3066_s27 + $0x1d4] sm:$0xf] %vm1936_vm2, %v2554_v23  ;;  %v1146_v25 = vadd.f32 %v2690_v24, %v3058_v2  ;;  %v2754_v26 = vpop.f32.mrb[56].mxu1  ;;  %v1137_v27 = vpop.f32.mrb[57].mxu0 }
 0x158   : > { %v1402_v28 = vadd.f32 %v2754_v26, %v3058_v2  ;;  %v1138_v29 = vadd.f32 %v3058_v2, %v1137_v27  ;;  %v1393_v30 = vpop.f32.mrb[57].mxu1  ;;  %v2691_v31 = vpop.f32.mrb[58].mxu0 }
 0x159   : > { %v2495_v32 = vpack.c.bf16 %v1146_v25, %v1146_v25  ;;  %v1394_v33 = vadd.f32 %v3058_v2, %v1393_v30  ;;  %v1149_v34 = vadd.f32 %v2691_v31, %v3058_v2  ;;  %v2755_v35 = vpop.f32.mrb[58].mxu1  ;;  %v1140_v36 = vpop.f32.mrb[59].mxu0 }
 0x15a   : > { %v2559_v37 = vpack.c.bf16 %v1402_v28, %v1402_v28  ;;  %v2493_v38 = vpack.c.bf16 %v1138_v29, %v1138_v29  ;;  %v1405_v39 = vadd.f32 %v2755_v35, %v3058_v2  ;;  %v1141_v40 = vadd.f32 %v3058_v2, %v1140_v36  ;;  %v1396_v41 = vpop.f32.mrb[59].mxu1 }
 0x15b   : > { %1995 = vst.msk [vmem:[%s3066_s27 + $0xe8] sm:$0xf] %vm1936_vm2, %v2495_v32  ;;  %v2557_v42 = vpack.c.bf16 %v1394_v33, %v1394_v33  ;;  %v2496_v43 = vpack.c.bf16 %v1149_v34, %v1149_v34  ;;  %v1397_v44 = vadd.f32 %v3058_v2, %v1396_v41 }
 0x15c   : > { %2059 = vst.msk [vmem:[%s3066_s27 + $0x1e8] sm:$0xf] %vm1936_vm2, %v2559_v37  ;;  %1993 = vst.msk [vmem:[%s3066_s27 + $0xe0] sm:$0xf] %vm1936_vm2, %v2493_v38  ;;  %v2560_v45 = vpack.c.bf16 %v1405_v39, %v1405_v39  ;;  %v2494_v46 = vpack.c.bf16 %v1141_v40, %v1141_v40 }
 0x15d   : > { %2057 = vst.msk [vmem:[%s3066_s27 + $0x1e0] sm:$0xf] %vm1936_vm2, %v2557_v42  ;;  %1996 = vst.msk [vmem:[%s3066_s27 + $0xec] sm:$0xf] %vm1936_vm2, %v2496_v43  ;;  %v2558_v47 = vpack.c.bf16 %v1397_v44, %v1397_v44 }
 0x15e   : > { %2060 = vst.msk [vmem:[%s3066_s27 + $0x1ec] sm:$0xf] %vm1936_vm2, %v2560_v45  ;;  %1994 = vst.msk [vmem:[%s3066_s27 + $0xe4] sm:$0xf] %vm1936_vm2, %v2494_v46  ;;  %v2694_v48 = vpop.f32.mrb[60].mxu0 }
 0x15f   : > { %2058 = vst.msk [vmem:[%s3066_s27 + $0x1e4] sm:$0xf] %vm1936_vm2, %v2558_v47  ;;  %v1162_v49 = vadd.f32 %v2694_v48, %v3058_v2  ;;  %v2758_v50 = vpop.f32.mrb[60].mxu1  ;;  %v1153_v51 = vpop.f32.mrb[61].mxu0 }
 0x160   : > { %v1418_v52 = vadd.f32 %v2758_v50, %v3058_v2  ;;  %v1154_v53 = vadd.f32 %v3058_v2, %v1153_v51  ;;  %v1409_v54 = vpop.f32.mrb[61].mxu1  ;;  %v2695_v55 = vpop.f32.mrb[62].mxu0 }
 0x161   : > { %v2499_v56 = vpack.c.bf16 %v1162_v49, %v1162_v49  ;;  %v1410_v57 = vadd.f32 %v3058_v2, %v1409_v54  ;;  %v1165_v58 = vadd.f32 %v2695_v55, %v3058_v2  ;;  %v2759_v59 = vpop.f32.mrb[62].mxu1  ;;  %v1156_v60 = vpop.f32.mrb[63].mxu0 }
 0x162   : > { %v2563_v61 = vpack.c.bf16 %v1418_v52, %v1418_v52  ;;  %v2497_v62 = vpack.c.bf16 %v1154_v53, %v1154_v53  ;;  %v1421_v63 = vadd.f32 %v2759_v59, %v3058_v2  ;;  %v1157_v0 = vadd.f32 %v3058_v2, %v1156_v60  ;;  %v1412_v1 = vpop.f32.mrb[63].mxu1 }
 0x163   : > { %1999 = vst.msk [vmem:[%s3066_s27 + $0xf8] sm:$0xf] %vm1936_vm2, %v2499_v56  ;;  %v2561_v3 = vpack.c.bf16 %v1410_v57, %v1410_v57  ;;  %v2500_v4 = vpack.c.bf16 %v1165_v58, %v1165_v58  ;;  %v1413_v5 = vadd.f32 %v3058_v2, %v1412_v1 }
 0x164   : > { %2063 = vst.msk [vmem:[%s3066_s27 + $0x1f8] sm:$0xf] %vm1936_vm2, %v2563_v61  ;;  %1997 = vst.msk [vmem:[%s3066_s27 + $0xf0] sm:$0xf] %vm1936_vm2, %v2497_v62  ;;  %v2564_v6 = vpack.c.bf16 %v1421_v63, %v1421_v63  ;;  %v2498_v7 = vpack.c.bf16 %v1157_v0, %v1157_v0 }
 0x165   : > { %2061 = vst.msk [vmem:[%s3066_s27 + $0x1f0] sm:$0xf] %vm1936_vm2, %v2561_v3  ;;  %2000 = vst.msk [vmem:[%s3066_s27 + $0xfc] sm:$0xf] %vm1936_vm2, %v2500_v4  ;;  %v2562_v8 = vpack.c.bf16 %v1413_v5, %v1413_v5 }
 0x166   : > { %2064 = vst.msk [vmem:[%s3066_s27 + $0x1fc] sm:$0xf] %vm1936_vm2, %v2564_v6  ;;  %1998 = vst.msk [vmem:[%s3066_s27 + $0xf4] sm:$0xf] %vm1936_vm2, %v2498_v7 }
 0x167   : > { %2062 = vst.msk [vmem:[%s3066_s27 + $0x1f4] sm:$0xf] %vm1936_vm2, %v2562_v8 }
 0x168 PF: > { %s13_s14 = sadd.s32 1, %s2874_s14   ;;  %s3464_s12 = smov %s2870_s13 }
 0x169   : > { %p10_p5 = scmp.ge.s32.totalorder %s13_s14, 18   ;;  %s3465_s13 = smov %s3467_s15 }
 0x16b   :  { %12 = sbr.rel (!%p10_p5) target bundleno = 2 (0x2), region = 68 }

</bundles_post_ra>
